<compile_context>
chip_gen: v5e
topology: v5e:2x2
jax: 0.10.0
libtpu: 0.0.40
codegen_flags: <defaults>
</compile_context>

<pallas_src>
import jax
import jax.numpy as jnp
from jax.experimental import pallas as pl
from jax.experimental.pallas import tpu as pltpu


# ----------------------------- configuration -------------------------------
ENTITY_DIM = 32        # args.entity_dim
EMB_HIDDEN = 64        # args.emb_hidden_size (num_emb_hidden_layers = 2)
HIDDEN = 64            # args.hidden_size     (num_hidden_layers = 2)
NUM_ENTITIES = 512
NUM_RELATIONS = 32
BATCH = 8
TAU = 0.5
USE_TAU = True
ENT_BLOCK = 128        # lane-dense entity tile; 512-2048 is the sweet spot at large N
# TODO(synk): hidden_dropout is identity in eval mode and is not emitted.


# ------------------------------- kernels ------------------------------------
def score_kernel(x_ref, w0_ref, b0_ref, w1_ref, b1_ref,
                 wl0_ref, bl0_ref, wl1_ref, bl1_ref,
                 wo_ref, bo_ref, e2t_ref,
                 logits_ref, m_ref, l_ref, hid_ref):
    """Grid axis = entity blocks.  Emits raw logits per block plus the running
    row-max (m) and row-sum-exp (l) online-softmax carry for the whole row."""
    f32 = jnp.float32
    j = pl.program_id(0)

    @pl.when(j == 0)
    def _init():
        # Fused entity/relation MLP (block-diagonal weights) + joint MLP.
        # relu after every layer except the last of each stack, matching the
        # PyTorch module; inv_tau is already folded into wo / bo.
        x = x_ref[...]                                                     # [B, 2D]
        h = jnp.maximum(
            jnp.dot(x, w0_ref[...], preferred_element_type=f32) + b0_ref[...], 0.0)
        h = jnp.dot(h, w1_ref[...], preferred_element_type=f32) + b1_ref[...]
        h = jnp.maximum(
            jnp.dot(h, wl0_ref[...], preferred_element_type=f32) + bl0_ref[...], 0.0)
        h = jnp.maximum(
            jnp.dot(h, wl1_ref[...], preferred_element_type=f32) + bl1_ref[...], 0.0)
        hid_ref[...] = jnp.dot(h, wo_ref[...], preferred_element_type=f32) + bo_ref[...]
        m_ref[...] = jnp.full_like(m_ref, -jnp.inf)
        l_ref[...] = jnp.zeros_like(l_ref)

    # Scores for this entity block (E2 pre-transposed -> lane-dense output).
    logits = jnp.dot(hid_ref[...], e2t_ref[...], preferred_element_type=f32)
    logits_ref[...] = logits

    # Online softmax statistics carried in the resident (constant-index) outputs.
    m_prev = m_ref[...]
    m_new = jnp.maximum(m_prev, jnp.max(logits, axis=1, keepdims=True))
    alpha = jnp.exp(m_prev - m_new)
    l_ref[...] = alpha * l_ref[...] + jnp.sum(jnp.exp(logits - m_new),
                                              axis=1, keepdims=True)
    m_ref[...] = m_new


def normalize_kernel(logits_ref, m_ref, l_ref, out_ref):
    inv_l = pl.reciprocal(l_ref[...], approx=False)   # exact: 1e-5 tolerance
    out_ref[...] = jnp.exp(logits_ref[...] - m_ref[...]) * inv_l


# ------------------------------- wrapper -------------------------------------
def _blockdiag(a, b):
    f32 = jnp.float32
    top = jnp.concatenate([a, jnp.zeros((a.shape[0], b.shape[1]), f32)], axis=1)
    bot = jnp.concatenate([jnp.zeros((b.shape[0], a.shape[1]), f32), b], axis=1)
    return jnp.concatenate([top, bot], axis=0)


def conkgc_forward(e1_emb, r_emb, all_ent_emb, params, inv_tau, ent_block=ENT_BLOCK):
    f32 = jnp.float32
    B0, D = e1_emb.shape
    N = all_ent_emb.shape[0]

    # Pad batch rows to a sublane multiple (>=8).  Throughput lever: pack >=128
    # (e1, r) pairs per call before any in-kernel micro-opts.
    B = max(8, ((B0 + 7) // 8) * 8)
    x = jnp.concatenate([e1_emb, r_emb], axis=1).astype(f32)      # [B0, 2D]
    if B != B0:
        x = jnp.pad(x, ((0, B - B0), (0, 0)))

    # ---- weight-static prep (once per parameter set, not per-call hot path) ----
    w0 = _blockdiag(params["we0"], params["wr0"])                  # [2D, 2He]
    b0 = jnp.concatenate([params["be0"], params["br0"]], axis=1)   # [1, 2He]
    w1 = _blockdiag(params["we1"], params["wr1"])                  # [2He, 2He]
    b1 = jnp.concatenate([params["be1"], params["br1"]], axis=1)   # [1, 2He]
    wo = params["wout"] * f32(inv_tau)                             # fold tau scaling
    bo = params["bout"] * f32(inv_tau)
    e2t = all_ent_emb.T.astype(f32)                                # [D, N]

    tn = ent_block if N % ent_block == 0 else N
    nb = N // tn

    def const_spec(arr):
        return pl.BlockSpec(arr.shape, lambda j: (0, 0))

    # Pass 1: streamed logits + online (m, l) statistics.
    logits, m, l = pl.pallas_call(
        score_kernel,
        out_shape=(jax.ShapeDtypeStruct((B, N), f32),
                   jax.ShapeDtypeStruct((B, 1), f32),
                   jax.ShapeDtypeStruct((B, 1), f32)),
        grid_spec=pltpu.PrefetchScalarGridSpec(
            num_scalar_prefetch=0,
            grid=(nb,),
            in_specs=[const_spec(x), const_spec(w0), const_spec(b0),
                      const_spec(w1), const_spec(b1),
                      const_spec(params["wl0"]), const_spec(params["bl0"]),
                      const_spec(params["wl1"]), const_spec(params["bl1"]),
                      const_spec(wo), const_spec(bo),
                      pl.BlockSpec((D, tn), lambda j: (0, j))],
            out_specs=[pl.BlockSpec((B, tn), lambda j: (0, j)),
                       pl.BlockSpec((B, 1), lambda j: (0, 0)),
                       pl.BlockSpec((B, 1), lambda j: (0, 0))],
            scratch_shapes=[pltpu.VMEM((B, D), f32)]),
        compiler_params=pltpu.CompilerParams(
            dimension_semantics=("arbitrary",)),       # online (m, l) carry
    )(x, w0, b0, w1, b1,
      params["wl0"], params["bl0"], params["wl1"], params["bl1"],
      wo, bo, e2t)

    # Pass 2: normalize each entity block independently.
    probs = pl.pallas_call(
        normalize_kernel,
        out_shape=jax.ShapeDtypeStruct((B, N), f32),
        grid_spec=pltpu.PrefetchScalarGridSpec(
            num_scalar_prefetch=0,
            grid=(nb,),
            in_specs=[pl.BlockSpec((B, tn), lambda j: (0, j)),
                      pl.BlockSpec((B, 1), lambda j: (0, 0)),
                      pl.BlockSpec((B, 1), lambda j: (0, 0))],
            out_specs=pl.BlockSpec((B, tn), lambda j: (0, j))),
        compiler_params=pltpu.CompilerParams(
            dimension_semantics=("parallel",)),        # independent entity blocks
    )(logits, m, l)

    return probs[:B0]


# ------------------------------ param builder --------------------------------
def init_params(key):
    D, He, H = ENTITY_DIM, EMB_HIDDEN, HIDDEN

    def linear_init(k, fan_in, fan_out):
        kw, kb = jax.random.split(k)
        bound = 1.0 / jnp.sqrt(fan_in)
        w = jax.random.uniform(kw, (fan_in, fan_out), jnp.float32, -bound, bound)
        b = jax.random.uniform(kb, (1, fan_out), jnp.float32, -bound, bound)
        return w, b

    keys = jax.random.split(key, 7)
    p = {}
    p["we0"], p["be0"] = linear_init(keys[0], D, He)
    p["we1"], p["be1"] = linear_init(keys[1], He, He)
    p["wr0"], p["br0"] = linear_init(keys[2], D, He)
    p["wr1"], p["br1"] = linear_init(keys[3], He, He)
    p["wl0"], p["bl0"] = linear_init(keys[4], 2 * He, H)
    p["wl1"], p["bl1"] = linear_init(keys[5], H, H)
    p["wout"], p["bout"] = linear_init(keys[6], H, D)
    return p


# ------------------------------ pure-JAX reference ---------------------------
def reference_forward(e1_emb, r_emb, all_ent_emb, p, inv_tau):
    relu = jax.nn.relu
    E1 = relu(e1_emb @ p["we0"] + p["be0"])
    E1 = E1 @ p["we1"] + p["be1"]
    R = relu(r_emb @ p["wr0"] + p["br0"])
    R = R @ p["wr1"] + p["br1"]
    S = jnp.concatenate([E1, R], axis=1)
    S = relu(S @ p["wl0"] + p["bl0"])
    S = relu(S @ p["wl1"] + p["bl1"])
    S = S @ p["wout"] + p["bout"]
    S = (S @ all_ent_emb.T) * inv_tau
    return jax.nn.softmax(S, axis=1)


# ----------------------------------- main ------------------------------------
if __name__ == "__main__":
    key = jax.random.PRNGKey(0)
    k_ent, k_rel, k_i1, k_i2, k_par = jax.random.split(key, 5)

    # embedding tables (the "kg" object in the PyTorch code)
    entity_table = jax.random.normal(k_ent, (NUM_ENTITIES, ENTITY_DIM),
                                     jnp.float32) * 0.1
    relation_table = jax.random.normal(k_rel, (NUM_RELATIONS, ENTITY_DIM),
                                       jnp.float32) * 0.1

    e1 = jax.random.randint(k_i1, (BATCH,), 0, NUM_ENTITIES)
    r = jax.random.randint(k_i2, (BATCH,), 0, NUM_RELATIONS)

    params = init_params(k_par)
    inv_tau = 1.0 / TAU if USE_TAU else 1.0

    # glue: embedding lookups (kg.get_*_embeddings)
    E1 = entity_table[e1]          # [B, entity_dim]
    R = relation_table[r]          # [B, entity_dim]
    E2 = entity_table              # [num_entities, entity_dim]

    out = jax.block_until_ready(conkgc_forward(E1, R, E2, params, inv_tau))

    ref = reference_forward(E1, R, E2, params, inv_tau)
    assert out.shape == (BATCH, NUM_ENTITIES)
    assert jnp.allclose(out, ref, atol=1e-5, rtol=1e-5), \
        float(jnp.max(jnp.abs(out - ref)))
    assert jnp.allclose(jnp.sum(out, axis=1), 1.0, atol=1e-5)

    print("KERNEL_OK")
</pallas_src>

<mosaic_0001>
module attributes {stable_mosaic.version = 11 : i64} {
  func.func @score_kernel(%arg0: i32, %arg1: memref<8x64xf32, #tpu.memory_space<vmem>>, %arg2: memref<64x128xf32, #tpu.memory_space<vmem>>, %arg3: memref<1x128xf32, #tpu.memory_space<vmem>>, %arg4: memref<128x128xf32, #tpu.memory_space<vmem>>, %arg5: memref<1x128xf32, #tpu.memory_space<vmem>>, %arg6: memref<128x64xf32, #tpu.memory_space<vmem>>, %arg7: memref<1x64xf32, #tpu.memory_space<vmem>>, %arg8: memref<64x64xf32, #tpu.memory_space<vmem>>, %arg9: memref<1x64xf32, #tpu.memory_space<vmem>>, %arg10: memref<64x32xf32, #tpu.memory_space<vmem>>, %arg11: memref<1x32xf32, #tpu.memory_space<vmem>>, %arg12: memref<32x128xf32, #tpu.memory_space<vmem>>, %arg13: memref<8x128xf32, #tpu.memory_space<vmem>>, %arg14: memref<8x1xf32, #tpu.memory_space<vmem>>, %arg15: memref<8x1xf32, #tpu.memory_space<vmem>>, %arg16: memref<8x32xf32, #tpu.memory_space<vmem>>) attributes {dimension_semantics = [#tpu.dimension_semantics<arbitrary>], iteration_bounds = array<i64: 4>, scalar_prefetch = 0 : i64, scratch_operands = 1 : i64, tpu.core_type = #tpu.core_type<tc>, window_params = [{pipeline_mode = #tpu.pipeline_mode<synchronous>, transform_indices = @transform_0, window_bounds = array<i64: 8, 64>}, {pipeline_mode = #tpu.pipeline_mode<synchronous>, transform_indices = @transform_1, window_bounds = array<i64: 64, 128>}, {pipeline_mode = #tpu.pipeline_mode<synchronous>, transform_indices = @transform_2, window_bounds = array<i64: 1, 128>}, {pipeline_mode = #tpu.pipeline_mode<synchronous>, transform_indices = @transform_3, window_bounds = array<i64: 128, 128>}, {pipeline_mode = #tpu.pipeline_mode<synchronous>, transform_indices = @transform_4, window_bounds = array<i64: 1, 128>}, {pipeline_mode = #tpu.pipeline_mode<synchronous>, transform_indices = @transform_5, window_bounds = array<i64: 128, 64>}, {pipeline_mode = #tpu.pipeline_mode<synchronous>, transform_indices = @transform_6, window_bounds = array<i64: 1, 64>}, {pipeline_mode = #tpu.pipeline_mode<synchronous>, transform_indices = @transform_7, window_bounds = array<i64: 64, 64>}, {pipeline_mode = #tpu.pipeline_mode<synchronous>, transform_indices = @transform_8, window_bounds = array<i64: 1, 64>}, {pipeline_mode = #tpu.pipeline_mode<synchronous>, transform_indices = @transform_9, window_bounds = array<i64: 64, 32>}, {pipeline_mode = #tpu.pipeline_mode<synchronous>, transform_indices = @transform_10, window_bounds = array<i64: 1, 32>}, {transform_indices = @transform_11, window_bounds = array<i64: 32, 128>}, {transform_indices = @transform_12, window_bounds = array<i64: 8, 128>}, {pipeline_mode = #tpu.pipeline_mode<synchronous>, transform_indices = @transform_13, window_bounds = array<i64: 8, 1>}, {pipeline_mode = #tpu.pipeline_mode<synchronous>, transform_indices = @transform_14, window_bounds = array<i64: 8, 1>}]} {
    %c0_i32 = arith.constant 0 : i32
    %0 = arith.cmpi eq, %arg0, %c0_i32 : i32
    %1 = arith.extui %0 : i1 to i32
    %c0_i32_0 = arith.constant 0 : i32
    %2 = arith.cmpi ne, %1, %c0_i32_0 : i32
    scf.if %2 {
      %c0_16 = arith.constant 0 : index
      %c0_17 = arith.constant 0 : index
      %23 = vector.load %arg1[%c0_16, %c0_17] : memref<8x64xf32, #tpu.memory_space<vmem>>, vector<8x64xf32>
      %c0_18 = arith.constant 0 : index
      %c0_19 = arith.constant 0 : index
      %24 = vector.load %arg2[%c0_18, %c0_19] : memref<64x128xf32, #tpu.memory_space<vmem>>, vector<64x128xf32>
      %cst_20 = arith.constant dense<0.000000e+00> : vector<8x128xf32>
      %25 = tpu.matmul %23, %24, %cst_20 {dimension_numbers = #tpu.dot_dimension_numbers<[1], [0], [0], [1], [0, 0, 1, 1], [], []>} : vector<8x64xf32>, vector<64x128xf32>, vector<8x128xf32> -> vector<8x128xf32>
      %c0_21 = arith.constant 0 : index
      %c0_22 = arith.constant 0 : index
      %26 = vector.load %arg3[%c0_21, %c0_22] : memref<1x128xf32, #tpu.memory_space<vmem>>, vector<1x128xf32>
      %27 = vector.broadcast %26 : vector<1x128xf32> to vector<8x128xf32>
      %28 = arith.addf %25, %27 : vector<8x128xf32>
      %cst_23 = arith.constant 0.000000e+00 : f32
      %29 = vector.broadcast %cst_23 : f32 to vector<8x128xf32>
      %30 = arith.maximumf %28, %29 : vector<8x128xf32>
      %c0_24 = arith.constant 0 : index
      %c0_25 = arith.constant 0 : index
      %31 = vector.load %arg4[%c0_24, %c0_25] : memref<128x128xf32, #tpu.memory_space<vmem>>, vector<128x128xf32>
      %cst_26 = arith.constant dense<0.000000e+00> : vector<8x128xf32>
      %32 = tpu.matmul %30, %31, %cst_26 {dimension_numbers = #tpu.dot_dimension_numbers<[1], [0], [0], [1], [0, 0, 1, 1], [], []>} : vector<8x128xf32>, vector<128x128xf32>, vector<8x128xf32> -> vector<8x128xf32>
      %c0_27 = arith.constant 0 : index
      %c0_28 = arith.constant 0 : index
      %33 = vector.load %arg5[%c0_27, %c0_28] : memref<1x128xf32, #tpu.memory_space<vmem>>, vector<1x128xf32>
      %34 = vector.broadcast %33 : vector<1x128xf32> to vector<8x128xf32>
      %35 = arith.addf %32, %34 : vector<8x128xf32>
      %c0_29 = arith.constant 0 : index
      %c0_30 = arith.constant 0 : index
      %36 = vector.load %arg6[%c0_29, %c0_30] : memref<128x64xf32, #tpu.memory_space<vmem>>, vector<128x64xf32>
      %cst_31 = arith.constant dense<0.000000e+00> : vector<8x64xf32>
      %37 = tpu.matmul %35, %36, %cst_31 {dimension_numbers = #tpu.dot_dimension_numbers<[1], [0], [0], [1], [0, 0, 1, 1], [], []>} : vector<8x128xf32>, vector<128x64xf32>, vector<8x64xf32> -> vector<8x64xf32>
      %c0_32 = arith.constant 0 : index
      %c0_33 = arith.constant 0 : index
      %38 = vector.load %arg7[%c0_32, %c0_33] : memref<1x64xf32, #tpu.memory_space<vmem>>, vector<1x64xf32>
      %39 = vector.broadcast %38 : vector<1x64xf32> to vector<8x64xf32>
      %40 = arith.addf %37, %39 : vector<8x64xf32>
      %cst_34 = arith.constant 0.000000e+00 : f32
      %41 = vector.broadcast %cst_34 : f32 to vector<8x64xf32>
      %42 = arith.maximumf %40, %41 : vector<8x64xf32>
      %c0_35 = arith.constant 0 : index
      %c0_36 = arith.constant 0 : index
      %43 = vector.load %arg8[%c0_35, %c0_36] : memref<64x64xf32, #tpu.memory_space<vmem>>, vector<64x64xf32>
      %cst_37 = arith.constant dense<0.000000e+00> : vector<8x64xf32>
      %44 = tpu.matmul %42, %43, %cst_37 {dimension_numbers = #tpu.dot_dimension_numbers<[1], [0], [0], [1], [0, 0, 1, 1], [], []>} : vector<8x64xf32>, vector<64x64xf32>, vector<8x64xf32> -> vector<8x64xf32>
      %c0_38 = arith.constant 0 : index
      %c0_39 = arith.constant 0 : index
      %45 = vector.load %arg9[%c0_38, %c0_39] : memref<1x64xf32, #tpu.memory_space<vmem>>, vector<1x64xf32>
      %46 = vector.broadcast %45 : vector<1x64xf32> to vector<8x64xf32>
      %47 = arith.addf %44, %46 : vector<8x64xf32>
      %cst_40 = arith.constant 0.000000e+00 : f32
      %48 = vector.broadcast %cst_40 : f32 to vector<8x64xf32>
      %49 = arith.maximumf %47, %48 : vector<8x64xf32>
      %c0_41 = arith.constant 0 : index
      %c0_42 = arith.constant 0 : index
      %50 = vector.load %arg10[%c0_41, %c0_42] : memref<64x32xf32, #tpu.memory_space<vmem>>, vector<64x32xf32>
      %cst_43 = arith.constant dense<0.000000e+00> : vector<8x32xf32>
      %51 = tpu.matmul %49, %50, %cst_43 {dimension_numbers = #tpu.dot_dimension_numbers<[1], [0], [0], [1], [0, 0, 1, 1], [], []>} : vector<8x64xf32>, vector<64x32xf32>, vector<8x32xf32> -> vector<8x32xf32>
      %c0_44 = arith.constant 0 : index
      %c0_45 = arith.constant 0 : index
      %52 = vector.load %arg11[%c0_44, %c0_45] : memref<1x32xf32, #tpu.memory_space<vmem>>, vector<1x32xf32>
      %53 = vector.broadcast %52 : vector<1x32xf32> to vector<8x32xf32>
      %54 = arith.addf %51, %53 : vector<8x32xf32>
      %c0_46 = arith.constant 0 : index
      %c0_47 = arith.constant 0 : index
      %55 = vector.load %arg16[%c0_46, %c0_47] : memref<8x32xf32, #tpu.memory_space<vmem>>, vector<8x32xf32>
      tpu.vector_store %arg16[%c0_46, %c0_47], %54 {strides = array<i32>} : memref<8x32xf32, #tpu.memory_space<vmem>>, vector<8x32xf32>,
      %cst_48 = arith.constant 0xFF800000 : f32
      %56 = vector.broadcast %cst_48 : f32 to vector<8x1xf32>
      %c0_49 = arith.constant 0 : index
      %c0_50 = arith.constant 0 : index
      %57 = vector.load %arg14[%c0_49, %c0_50] : memref<8x1xf32, #tpu.memory_space<vmem>>, vector<8x1xf32>
      tpu.vector_store %arg14[%c0_49, %c0_50], %56 {strides = array<i32>} : memref<8x1xf32, #tpu.memory_space<vmem>>, vector<8x1xf32>,
      %cst_51 = arith.constant 0.000000e+00 : f32
      %58 = vector.broadcast %cst_51 : f32 to vector<8x1xf32>
      %c0_52 = arith.constant 0 : index
      %c0_53 = arith.constant 0 : index
      %59 = vector.load %arg15[%c0_52, %c0_53] : memref<8x1xf32, #tpu.memory_space<vmem>>, vector<8x1xf32>
      tpu.vector_store %arg15[%c0_52, %c0_53], %58 {strides = array<i32>} : memref<8x1xf32, #tpu.memory_space<vmem>>, vector<8x1xf32>,
    } else {
    }
    %c0 = arith.constant 0 : index
    %c0_1 = arith.constant 0 : index
    %3 = vector.load %arg16[%c0, %c0_1] : memref<8x32xf32, #tpu.memory_space<vmem>>, vector<8x32xf32>
    %c0_2 = arith.constant 0 : index
    %c0_3 = arith.constant 0 : index
    %4 = vector.load %arg12[%c0_2, %c0_3] : memref<32x128xf32, #tpu.memory_space<vmem>>, vector<32x128xf32>
    %cst = arith.constant dense<0.000000e+00> : vector<8x128xf32>
    %5 = tpu.matmul %3, %4, %cst {dimension_numbers = #tpu.dot_dimension_numbers<[1], [0], [0], [1], [0, 0, 1, 1], [], []>} : vector<8x32xf32>, vector<32x128xf32>, vector<8x128xf32> -> vector<8x128xf32>
    %c0_4 = arith.constant 0 : index
    %c0_5 = arith.constant 0 : index
    %6 = vector.load %arg13[%c0_4, %c0_5] : memref<8x128xf32, #tpu.memory_space<vmem>>, vector<8x128xf32>
    tpu.vector_store %arg13[%c0_4, %c0_5], %5 {strides = array<i32>} : memref<8x128xf32, #tpu.memory_space<vmem>>, vector<8x128xf32>,
    %c0_6 = arith.constant 0 : index
    %c0_7 = arith.constant 0 : index
    %7 = vector.load %arg14[%c0_6, %c0_7] : memref<8x1xf32, #tpu.memory_space<vmem>>, vector<8x1xf32>
    %cst_8 = arith.constant dense<0xFF800000> : vector<8xf32>
    %8 = vector.multi_reduction <maximumf>, %5, %cst_8 [1] : vector<8x128xf32> to vector<8xf32>
    %9 = vector.shape_cast %8 : vector<8xf32> to vector<8x1xf32>
    %10 = arith.maximumf %7, %9 : vector<8x1xf32>
    %11 = arith.subf %7, %10 : vector<8x1xf32>
    %12 = math.exp %11 : vector<8x1xf32>
    %c0_9 = arith.constant 0 : index
    %c0_10 = arith.constant 0 : index
    %13 = vector.load %arg15[%c0_9, %c0_10] : memref<8x1xf32, #tpu.memory_space<vmem>>, vector<8x1xf32>
    %14 = arith.mulf %12, %13 : vector<8x1xf32>
    %15 = vector.broadcast %10 : vector<8x1xf32> to vector<8x128xf32>
    %16 = arith.subf %5, %15 : vector<8x128xf32>
    %17 = math.exp %16 : vector<8x128xf32>
    %cst_11 = arith.constant dense<0.000000e+00> : vector<8xf32>
    %18 = vector.multi_reduction <add>, %17, %cst_11 [1] : vector<8x128xf32> to vector<8xf32>
    %19 = vector.shape_cast %18 : vector<8xf32> to vector<8x1xf32>
    %20 = arith.addf %14, %19 : vector<8x1xf32>
    %c0_12 = arith.constant 0 : index
    %c0_13 = arith.constant 0 : index
    %21 = vector.load %arg15[%c0_12, %c0_13] : memref<8x1xf32, #tpu.memory_space<vmem>>, vector<8x1xf32>
    tpu.vector_store %arg15[%c0_12, %c0_13], %20 {strides = array<i32>} : memref<8x1xf32, #tpu.memory_space<vmem>>, vector<8x1xf32>,
    %c0_14 = arith.constant 0 : index
    %c0_15 = arith.constant 0 : index
    %22 = vector.load %arg14[%c0_14, %c0_15] : memref<8x1xf32, #tpu.memory_space<vmem>>, vector<8x1xf32>
    tpu.vector_store %arg14[%c0_14, %c0_15], %10 {strides = array<i32>} : memref<8x1xf32, #tpu.memory_space<vmem>>, vector<8x1xf32>,
    return
  }
  func.func @transform_0(%arg0: i32) -> (i32, i32) {
    %c0_i32 = arith.constant 0 : i32
    %c0_i32_0 = arith.constant 0 : i32
    %c0_i32_1 = arith.constant 0 : i32
    return %c0_i32, %c0_i32_0 : i32, i32
  }
  func.func @transform_1(%arg0: i32) -> (i32, i32) {
    %c0_i32 = arith.constant 0 : i32
    %c0_i32_0 = arith.constant 0 : i32
    %c0_i32_1 = arith.constant 0 : i32
    return %c0_i32, %c0_i32_0 : i32, i32
  }
  func.func @transform_2(%arg0: i32) -> (i32, i32) {
    %c0_i32 = arith.constant 0 : i32
    %c0_i32_0 = arith.constant 0 : i32
    %c0_i32_1 = arith.constant 0 : i32
    return %c0_i32, %c0_i32_0 : i32, i32
  }
  func.func @transform_3(%arg0: i32) -> (i32, i32) {
    %c0_i32 = arith.constant 0 : i32
    %c0_i32_0 = arith.constant 0 : i32
    %c0_i32_1 = arith.constant 0 : i32
    return %c0_i32, %c0_i32_0 : i32, i32
  }
  func.func @transform_4(%arg0: i32) -> (i32, i32) {
    %c0_i32 = arith.constant 0 : i32
    %c0_i32_0 = arith.constant 0 : i32
    %c0_i32_1 = arith.constant 0 : i32
    return %c0_i32, %c0_i32_0 : i32, i32
  }
  func.func @transform_5(%arg0: i32) -> (i32, i32) {
    %c0_i32 = arith.constant 0 : i32
    %c0_i32_0 = arith.constant 0 : i32
    %c0_i32_1 = arith.constant 0 : i32
    return %c0_i32, %c0_i32_0 : i32, i32
  }
  func.func @transform_6(%arg0: i32) -> (i32, i32) {
    %c0_i32 = arith.constant 0 : i32
    %c0_i32_0 = arith.constant 0 : i32
    %c0_i32_1 = arith.constant 0 : i32
    return %c0_i32, %c0_i32_0 : i32, i32
  }
  func.func @transform_7(%arg0: i32) -> (i32, i32) {
    %c0_i32 = arith.constant 0 : i32
    %c0_i32_0 = arith.constant 0 : i32
    %c0_i32_1 = arith.constant 0 : i32
    return %c0_i32, %c0_i32_0 : i32, i32
  }
  func.func @transform_8(%arg0: i32) -> (i32, i32) {
    %c0_i32 = arith.constant 0 : i32
    %c0_i32_0 = arith.constant 0 : i32
    %c0_i32_1 = arith.constant 0 : i32
    return %c0_i32, %c0_i32_0 : i32, i32
  }
  func.func @transform_9(%arg0: i32) -> (i32, i32) {
    %c0_i32 = arith.constant 0 : i32
    %c0_i32_0 = arith.constant 0 : i32
    %c0_i32_1 = arith.constant 0 : i32
    return %c0_i32, %c0_i32_0 : i32, i32
  }
  func.func @transform_10(%arg0: i32) -> (i32, i32) {
    %c0_i32 = arith.constant 0 : i32
    %c0_i32_0 = arith.constant 0 : i32
    %c0_i32_1 = arith.constant 0 : i32
    return %c0_i32, %c0_i32_0 : i32, i32
  }
  func.func @transform_11(%arg0: i32) -> (i32, i32) {
    %c0_i32 = arith.constant 0 : i32
    %c0_i32_0 = arith.constant 0 : i32
    return %c0_i32, %arg0 : i32, i32
  }
  func.func @transform_12(%arg0: i32) -> (i32, i32) {
    %c0_i32 = arith.constant 0 : i32
    %c0_i32_0 = arith.constant 0 : i32
    return %c0_i32, %arg0 : i32, i32
  }
  func.func @transform_13(%arg0: i32) -> (i32, i32) {
    %c0_i32 = arith.constant 0 : i32
    %c0_i32_0 = arith.constant 0 : i32
    %c0_i32_1 = arith.constant 0 : i32
    return %c0_i32, %c0_i32_0 : i32, i32
  }
  func.func @transform_14(%arg0: i32) -> (i32, i32) {
    %c0_i32 = arith.constant 0 : i32
    %c0_i32_0 = arith.constant 0 : i32
    %c0_i32_1 = arith.constant 0 : i32
    return %c0_i32, %c0_i32_0 : i32, i32
  }
}

</mosaic_0001>

<bundles_post_ra>
// kernel: tpu_custom_call.1
= control target key start
LH: loop header
LB: loop body
LE: loop exit
PB: predicated region body
PF: predicated region fallthrough
CT: control target
= control target key end

     0   :  { %s1509_s0 = inlined_call_operand.vmem [shape: f32[8,64], index: 0, kind: input, shape index: {}]   ;;  %s1510_s1 = inlined_call_operand.vmem [shape: f32[64,128], index: 1, kind: input, shape index: {}]   ;;  %s1511_s2 = inlined_call_operand.vmem [shape: f32[1,128], index: 2, kind: input, shape index: {}]   ;;  %s1512_s3 = inlined_call_operand.vmem [shape: f32[128,128], index: 3, kind: input, shape index: {}]   ;;  %s1513_s4 = inlined_call_operand.vmem [shape: f32[1,128], index: 4, kind: input, shape index: {}]   ;;  %s1514_s5 = inlined_call_operand.vmem [shape: f32[128,64], index: 5, kind: input, shape index: {}]   ;;  %s1515_s6 = inlined_call_operand.vmem [shape: f32[1,64], index: 6, kind: input, shape index: {}]   ;;  %s1516_s7 = inlined_call_operand.hbm [shape: f32[64,64], index: 7, kind: input, shape index: {}]   ;;  %s1517_s8 = inlined_call_operand.vmem [shape: f32[1,64], index: 8, kind: input, shape index: {}]   ;;  %s1518_s9 = inlined_call_operand.vmem [shape: f32[64,32], index: 9, kind: input, shape index: {}]   ;;  %s1519_s10 = inlined_call_operand.vmem [shape: f32[1,32], index: 10, kind: input, shape index: {}]   ;;  %s1520_s11 = inlined_call_operand.hbm [shape: f32[32,512], index: 11, kind: input, shape index: {}]   ;;  %s1521_s12 = inlined_call_operand.hbm [shape: f32[8,512], index: 12, kind: output, shape index: {0}]   ;;  %s1522_s13 = inlined_call_operand.vmem [shape: f32[8,1], index: 13, kind: output, shape index: {1}]   ;;  %s1523_s14 = inlined_call_operand.vmem [shape: f32[8,1], index: 14, kind: output, shape index: {2}]  }
   0x1   :  { %1533 = sst [smem:[#allocation18_spill]] %s1516_s7 }
   0x2   :  { %1534 = sst [smem:[#allocation19_spill]] %s1519_s10 }
   0x3   :  { %1535 = sst [smem:[#allocation20_spill]] %s1521_s12 }
   0x4   :  { %20 = vsyncpa [#allocation4], 0 }
   0x5   :  { %21 = vsyncpa [#allocation7], 0 }
   0x6   :  { %23 = vsyncpa [#allocation7 + $0x1], 0 }
   0x7   :  { %24 = vsyncpa [#allocation5], 0 }
   0x8   :  { %26 = vsyncpa [#allocation5 + $0x1], 0  ;;  %s1167_s29 = smov 0   ;;  %s1169_s30 = smov 0  }
   0x9   :  { %s1171_s15 = smov 0   ;;  %s1173_s16 = smov 0  }
   0xa LB: > { %1536 = sst [smem:[#allocation12_spill]] %s1071_s29  ;;  %s1188_s17 = sadd.s32 4294967295, %s1083_s16   ;;  %s1083_s16 = sphi %s1173_s16, %s1556_s16   ;;  %s1079_s15 = sphi %s1171_s15, %s1558_s15   ;;  %s1075_s30 = sphi %s1169_s30, %s1560_s30   ;;  %s1071_s29 = sphi %s1167_s29, %s1559_s29  }
   0xb   : > { %1537 = sst [smem:[#allocation13_spill]] %s1079_s15  ;;  %s861_s18 = sadd.s32 4294967294, %s1083_s16  }
   0xc   : > { %1538 = sst [smem:[#allocation14_spill]] %s1083_s16  ;;  %p283_p0 = scmp.ne.s32.totalorder %s1075_s30, %s1071_s29 }
   0xd   : > { %p284_p1 = scmp.eq.s32.totalorder %s1188_s17, 0  ;;  %p307_p2 = scmp.eq.s32.totalorder %s1188_s17, 3 }
   0xe   : > { %p313_p3 = scmp.eq.s32.totalorder %s861_s18, 3  ;;  %p862_p5 = scmp.ge.s32.totalorder %s1083_s16, 1 }
   0xf   : > { %p1197_p4 = por %p284_p1, %p283_p0  ;;  %p362_p7 = scmp.lt.s32.totalorder %s1083_s16, 5 }
  0x10   : > { %p1202_p6 = por %p313_p3, %p283_p0  ;;  %s1542_s7 = sld [smem:[#allocation18_spill]] }
  0x11   : > { %p1211_p9 = pnand %p862_p5, %p362_p7  ;;  %s1085_s25 = smov [#allocation3]  }
  0x12   : > { %s1540_s20 = scalar_select %p1202_p6, 1, 0 }
  0x13   : > { %p888_p10 = pneg %p1211_p9  ;;  %s396_s26 = sshll.u32 %s1085_s25, 4  ;;  %s397_s26 = int_to_ptr.vmem [resolvable:$true] %s396_s26 }
  0x14   : > { %1541 = sst [smem:[#allocation15_spill]] %s1540_s20  ;;  %s1220_s27 = sadd.s32 1, %s1083_s16  }
  0x15   : > { %p889_p11 = pnand %p888_p10, %p284_p1  ;;  %1544 = sst [smem:[#allocation16_spill]] %s1220_s27 }
  0x16   : > { %s394_s23 = sshll.u32 %s1542_s7, 4  ;;  %s1527_s28 = smov 128   ;;  %s395_s23 = int_to_ptr.hbm [resolvable:$true] %s394_s23 }
  0x17   : > { %s1528_s18 = smov 8   ;;  %s267_s21 = ssub.s32 %s1083_s16, %s1220_s27 }
  0x18   : > { %891 = dma.hbm_to_vmem [thread:$0]  (!%p889_p11), %s395_s23, 1024, %s397_s26, [#allocation4], %s1527_s28, %s1527_s28, %s1528_s18  }
  0x19   : > { %s270_s22 = sadd.s32 1, %s1079_s15  ;;  %p268_p12 = scmp.eq.s32.totalorder %s267_s21, 0 }
  0x1a   : > { %p277_p13 = scmp.ne.s32.totalorder %s1079_s15, %s1075_s30  ;;  %p278_p0 = scmp.eq.s32.totalorder %s1083_s16, 0 }
  0x1b   : > { %p901_p3 = scmp.lt.s32.totalorder %s1083_s16, 4  ;;  %s419_s20 = sand.u32 1, %s1079_s15  }
  0x1c   : > { %s1233_s25 = scalar_select %p268_p12, %s1079_s15, %s270_s22  }
  0x1d   : > { %p279_p5 = por %p278_p0, %p277_p13  ;;  %p1237_p7 = por %p307_p2, %p277_p13 }
  0x1e   : > { %1545 = sst [smem:[#allocation17_spill]] %s1233_s25  ;;  %s866_s29 = sshll.u32 %s1083_s16, 3 }
  0x1f   : > { %s865_s12 = sshll.u32 %s419_s20, 5  ;;  %s427_s26 = scalar_lea.hbm %s1520_s11, %s866_s29 }
  0x20   : > { %s428_s21 = sshll.u32 %s427_s26, 4  ;;  %s423_s28 = scalar_lea.vmem [#allocation6], %s865_s12  ;;  %s429_s21 = int_to_ptr.hbm [resolvable:$true] %s428_s21 }
  0x21   : > { %s430_s18 = sshll.u32 %s423_s28, 4  ;;  %p1248_p10 = pnand %p901_p3, %p279_p5  ;;  %s431_s18 = int_to_ptr.vmem [resolvable:$true] %s430_s18 }
  0x22   : > { %s420_s25 = scalar_lea.sflag [#allocation7], %s419_s20  ;;  %s983_s27 = sshra.s32 %s429_s21, 4  ;;  %s984_s27 = int_to_ptr.hbm [resolvable:$true] %s983_s27 }
  0x23   : > { %s985_s15 = scalar_lea.hbm %s984_s27, 32  ;;  %p987_p11 = pneg %p1248_p10 }
  0x24   : > { %p986_p2 = scmp.ne.s32.totalorder %s984_s27, %s985_s15  ;;  %s990_s29 = scalar_lea.hbm %s1520_s11, 128 }
  0x25   : > { %p991_p0 = scmp.lt.s32.totalorder %s984_s27, %s1520_s11  ;;  %p992_p3 = scmp.lt.s32.totalorder %s990_s29, %s985_s15 }
  0x26   : > { %p988_p12 = pnand %p987_p11, %p986_p2 }
  0x27   : > { %p993_p5 = por %p992_p3, %p991_p0 }
  0x28   : > { %p989_p13 = pneg %p988_p12 }
  0x2a   : > { %p994_p8 = pnand %p993_p5, %p989_p13 }
  0x2c   : > { %997 = shalt.err (!%p994_p8)
}
  0x2d   : > { %s1088_s20 = smov 512   ;;  %s1548_s26 = smov 8  }
  0x2e   : > { %s1549_s16 = smov 128   ;;  %442 = sbr.rel (%p1211_p9) target bundleno = 1235 (0x4d3), region = 68 }
  0x2f   : > { %895 = dma.hbm_to_vmem [thread:$0]  (!%p1248_p10), %s429_s21, 512, %s431_s18, %s420_s25, %s1088_s20, %s1549_s16, %s1548_s26  }
  0x33   : > { %1058 = dma.done.wait (%p284_p1), [#allocation4], 1024  }
  0x34   : > { %1060 = vsyncadd (%p284_p1), [#allocation4], 4294966272  ;;  %s1271_s15 = sand.u32 1, %s1075_s30  }
  0x35   : > { %s869_s27 = sshll.u32 %s1271_s15, 5  ;;  %s450_s22 = scalar_lea.sflag [#allocation7], %s1271_s15 }
  0x36   : > { %s1275_s10 = scalar_lea.vmem [#allocation6], %s869_s27 }
  0x37   : > { %1062 = dma.done.wait (%p1197_p4), %s450_s22, 512  }
  0x38   : > { %1064 = vsyncadd (%p1197_p4), %s450_s22, 4294966784  ;;  %s870_s16 = sshll.u32 %s1271_s15, 3  ;;  %p1550_p1 = scmp.ne.s32.totalorder %s1188_s17, 0 }
  0x39   : > { %s1282_s24 = scalar_lea.vmem [#allocation8], %s870_s16  ;;  %s1551_s20 = sld [smem:[#allocation19_spill]] (!%p1550_p1) }
  0x3a   : > { %502 = sbr.rel (%p1550_p1) target bundleno = 738 (0x2e2), region = 80 }
  0x3f   : > { %v511_v0 = vld [vmem:[%s1510_s1 + $0x38] sm:$0xff]  ;;  %v510_v1 = vld [vmem:[%s1510_s1 + $0x30] sm:$0xff]  ;;  %v509_v2 = vld [vmem:[%s1510_s1 + $0x28] sm:$0xff]  ;;  %vm516_vm0 = vcmask 523264   ;;  %vm695_vm1 = vcmask 7168   ;;  %vm693_vm2 = vcmask 261120  }
  0x40   : > { %528 = vmatpush.msra.mxu0 %v511_v0  ;;  %v556_v3 = vld [vmem:[%s1512_s3 + $0x78] sm:$0xff]  ;;  %v555_v4 = vld [vmem:[%s1512_s3 + $0x70] sm:$0xff]  ;;  %v508_v5 = vld [vmem:[%s1510_s1 + $0x20] sm:$0xff] }
  0x41   : > { %561 = vmatpush.msra.mxu1 %v556_v3  ;;  %v554_v6 = vld [vmem:[%s1512_s3 + $0x68] sm:$0xff]  ;;  %v507_v7 = vld [vmem:[%s1510_s1 + $0x18] sm:$0xff]  ;;  %v506_v8 = vld [vmem:[%s1510_s1 + $0x10] sm:$0xff] }
  0x42   : > { %529 = vmatpush.msra.mxu0 %v510_v1  ;;  %v553_v9 = vld [vmem:[%s1512_s3 + $0x60] sm:$0xff]  ;;  %v552_v10 = vld [vmem:[%s1512_s3 + $0x58] sm:$0xff]  ;;  %v505_v11 = vld [vmem:[%s1510_s1 + $0x8] sm:$0xff] }
  0x43   : > { %562 = vmatpush.msra.mxu1 %v555_v4  ;;  %v551_v12 = vld [vmem:[%s1512_s3 + $0x50] sm:$0xff]  ;;  %v504_v13 = vld [vmem:[%s1510_s1] sm:$0xff]  ;;  %v550_v15 = vld [vmem:[%s1512_s3 + $0x48] sm:$0xff] }
  0x44   : > { %530 = vmatpush.msra.mxu0 %v509_v2  ;;  %v503_v14 = vld [vmem:[%s1509_s0] sm:$0xff]  ;;  %v548_v17 = vld [vmem:[%s1512_s3 + $0x38] sm:$0xff]  ;;  %v547_v18 = vld [vmem:[%s1512_s3 + $0x30] sm:$0xff] }
  0x45   : > { %563 = vmatpush.msra.mxu1 %v554_v6  ;;  %v549_v16 = vld [vmem:[%s1512_s3 + $0x40] sm:$0xff]  ;;  %v546_v19 = vld [vmem:[%s1512_s3 + $0x28] sm:$0xff]  ;;  %v544_v21 = vld [vmem:[%s1512_s3 + $0x18] sm:$0xff] }
  0x46   : > { %531 = vmatpush.msra.mxu0 %v508_v5  ;;  %v545_v20 = vld [vmem:[%s1512_s3 + $0x20] sm:$0xff]  ;;  %v543_v22 = vld [vmem:[%s1512_s3 + $0x10] sm:$0xff]  ;;  %v542_v23 = vld [vmem:[%s1512_s3 + $0x8] sm:$0xff] }
  0x47   : > { %564 = vmatpush.msra.mxu1 %v553_v9  ;;  %v541_v24 = vld [vmem:[%s1512_s3] sm:$0xff]  ;;  %v596_v25 = vld [vmem:[%s1514_s5 + $0x78] sm:$0xff]  ;;  %v595_v26 = vld [vmem:[%s1514_s5 + $0x70] sm:$0xff]  ;;  %v1090_v9 = vmov 0.0  }
  0x48   : > { %532 = vmatpush.msra.mxu0 %v507_v7  ;;  %601 = vmatpush.msra.mxu2 %v596_v25  ;;  %v594_v27 = vld [vmem:[%s1514_s5 + $0x68] sm:$0xff]  ;;  %v593_v28 = vld [vmem:[%s1514_s5 + $0x60] sm:$0xff]  ;;  %v592_v29 = vld [vmem:[%s1514_s5 + $0x58] sm:$0xff]  ;;  %697 = vst.msk [vmem:[%s1523_s14] sm:$0xff] %vm695_vm1, %v1090_v9 }
  0x49   : > { %565 = vmatpush.msra.mxu1 %v552_v10  ;;  %v591_v30 = vld [vmem:[%s1514_s5 + $0x50] sm:$0xff]  ;;  %v590_v31 = vld [vmem:[%s1514_s5 + $0x48] sm:$0xff]  ;;  %v589_v32 = vld [vmem:[%s1514_s5 + $0x40] sm:$0xff] }
  0x4a   : > { %533 = vmatpush.msra.mxu0 %v506_v8  ;;  %602 = vmatpush.msra.mxu2 %v595_v26  ;;  %v588_v33 = vld [vmem:[%s1514_s5 + $0x38] sm:$0xff]  ;;  %v587_v34 = vld [vmem:[%s1514_s5 + $0x30] sm:$0xff]  ;;  %v586_v35 = vld [vmem:[%s1514_s5 + $0x28] sm:$0xff]  ;;  %v1089_v8 = vmov -inf  }
  0x4b   : > { %566 = vmatpush.msra.mxu1 %v551_v12  ;;  %v585_v36 = vld [vmem:[%s1514_s5 + $0x20] sm:$0xff]  ;;  %v584_v37 = vld [vmem:[%s1514_s5 + $0x18] sm:$0xff]  ;;  %v583_v39 = vld [vmem:[%s1514_s5 + $0x10] sm:$0xff]  ;;  %696 = vst.msk [vmem:[%s1522_s13] sm:$0xff] %vm695_vm1, %v1089_v8 }
  0x4c   : > { %534 = vmatpush.msra.mxu0 %v505_v11  ;;  %603 = vmatpush.msra.mxu2 %v594_v27  ;;  %v943_v38 = vld [vmem:[%s1511_s2] ss:$0 sm:$0xff]  ;;  %v582_v43 = vld [vmem:[%s1514_s5 + $0x8] sm:$0xff]  ;;  %v628_v46 = vld [vmem:[#allocation3 + $0x30] sm:$0xff] }
  0x4d   : > { %567 = vmatpush.msra.mxu1 %v550_v15  ;;  %v581_v44 = vld [vmem:[%s1514_s5] sm:$0xff]  ;;  %v627_v47 = vld [vmem:[#allocation3 + $0x28] sm:$0xff]  ;;  %v626_v48 = vld [vmem:[#allocation3 + $0x20] sm:$0xff] }
  0x4e   : > { %535 = vmatpush.msra.mxu0 %v504_v13  ;;  %604 = vmatpush.msra.mxu2 %v593_v28  ;;  %v629_v45 = vld [vmem:[#allocation3 + $0x38] sm:$0xff]  ;;  %v624_v53 = vld [vmem:[#allocation3 + $0x10] sm:$0xff]  ;;  %v623_v54 = vld [vmem:[#allocation3 + $0x8] sm:$0xff] }
  0x4f   : > { %872 = vmatmul.msk.f32.vlgmr.msra.gmra.mxu0 %vm516_vm0, %v503_v14  ;;  %568 = vmatpush.msra.mxu1 %v549_v16  ;;  %v625_v49 = vld [vmem:[#allocation3 + $0x18] sm:$0xff]  ;;  %v622_v55 = vld [vmem:[#allocation3] sm:$0xff]  ;;  %v665_v56 = vld [vmem:[%s1518_s9 + $0x38] sm:$0xff] }
  0x50   : > { %605 = vmatpush.msra.mxu2 %v592_v29  ;;  %645 = vmatpush.msra.mxu3 %v629_v45  ;;  %v944_v50 = vld [vmem:[%s1513_s4] ss:$0 sm:$0xff]  ;;  %v664_v57 = vld [vmem:[%s1518_s9 + $0x30] sm:$0xff]  ;;  %v663_v58 = vld [vmem:[%s1518_s9 + $0x28] sm:$0xff] }
  0x51   : > { %569 = vmatpush.msra.mxu1 %v548_v17  ;;  %681 = vmatpush.msrb.mxu0 %v665_v56  ;;  %v662_v59 = vld [vmem:[%s1518_s9 + $0x20] sm:$0xff]  ;;  %v661_v60 = vld [vmem:[%s1518_s9 + $0x18] sm:$0xff]  ;;  %v660_v1 = vld [vmem:[%s1518_s9 + $0x10] sm:$0xff] }
  0x52   : > { %606 = vmatpush.msra.mxu2 %v591_v30  ;;  %646 = vmatpush.msra.mxu3 %v628_v46  ;;  %v945_v61 = vld [vmem:[%s1515_s6] ss:$0 sm:$0xff]  ;;  %v659_v2 = vld [vmem:[%s1518_s9 + $0x8] sm:$0xff] }
  0x53   : > { %570 = vmatpush.msra.mxu1 %v547_v18  ;;  %682 = vmatpush.msrb.mxu0 %v664_v57  ;;  %v658_v3 = vld [vmem:[%s1518_s9] sm:$0xff] }
  0x54   : > { %607 = vmatpush.msra.mxu2 %v590_v31  ;;  %647 = vmatpush.msra.mxu3 %v627_v47  ;;  %v946_v4 = vld [vmem:[%s1517_s8] ss:$0 sm:$0xff] }
  0x55   : > { %571 = vmatpush.msra.mxu1 %v546_v19  ;;  %683 = vmatpush.msrb.mxu0 %v663_v58  ;;  %v947_v10 = vld [vmem:[%s1551_s20] ss:$0 sm:$0xff] }
  0x56   : > { %608 = vmatpush.msra.mxu2 %v589_v32  ;;  %648 = vmatpush.msra.mxu3 %v626_v48 }
  0x57   : > { %572 = vmatpush.msra.mxu1 %v545_v20  ;;  %684 = vmatpush.msrb.mxu0 %v662_v59 }
  0x58   : > { %609 = vmatpush.msra.mxu2 %v588_v33  ;;  %649 = vmatpush.msra.mxu3 %v625_v49 }
  0x59   : > { %573 = vmatpush.msra.mxu1 %v544_v21  ;;  %685 = vmatpush.msrb.mxu0 %v661_v60 }
  0x5a   : > { %610 = vmatpush.msra.mxu2 %v587_v34  ;;  %650 = vmatpush.msra.mxu3 %v624_v53 }
  0x5b   : > { %574 = vmatpush.msra.mxu1 %v543_v22  ;;  %686 = vmatpush.msrb.mxu0 %v660_v1 }
  0x5c   : > { %611 = vmatpush.msra.mxu2 %v586_v35  ;;  %651 = vmatpush.msra.mxu3 %v623_v54 }
  0x5d   : > { %575 = vmatpush.msra.mxu1 %v542_v23  ;;  %687 = vmatpush.msrb.mxu0 %v659_v2 }
  0x5e   : > { %612 = vmatpush.msra.mxu2 %v585_v36  ;;  %652 = vmatpush.msra.mxu3 %v622_v55 }
  0x5f   : > { %576 = vmatpush.msra.mxu1 %v541_v24  ;;  %688 = vmatpush.msrb.mxu0 %v658_v3 }
  0x60   : > { %613 = vmatpush.msra.mxu2 %v584_v37 }
  0x62   : > { %614 = vmatpush.msra.mxu2 %v583_v39 }
  0x64   : > { %615 = vmatpush.msra.mxu2 %v582_v43 }
  0x66   : > { %616 = vmatpush.msra.mxu2 %v581_v44 }
  0xcc   : > { %v537_v40 = vpop.f32.mrf.mxu0 }
  0xcd   : > { %v538_v41 = vadd.f32 %v943_v38, %v537_v40 }
  0xcf   : > { %v540_v42 = vmax.f32 %v538_v41, 0.0 }
  0xd1   : > { %577 = vmatmul.f32.vlgmr.msra.gmra.mxu1 %v540_v42 }
 0x14e   : > { %v578_v51 = vpop.f32.mrf.mxu1 }
 0x14f   : > { %v579_v52 = vadd.f32 %v944_v50, %v578_v51 }
 0x151   : > { %617 = vmatmul.f32.vlgmr.msra.gmra.mxu2 %v579_v52 }
 0x1d4   : > { %v618_v62 = vpop.f32.mrf.mxu2 }
 0x1d5   : > { %v619_v63 = vadd.f32 %v945_v61, %v618_v62 }
 0x1d7   : > { %v621_v0 = vmax.f32 %v619_v63, 0.0 }
 0x1d9   : > { %873 = vmatmul.msk.f32.vlgmr.msra.gmra.mxu3 %vm516_vm0, %v621_v0 }
 0x25c   : > { %v654_v5 = vpop.f32.mrf.mxu3 }
 0x25d   : > { %v655_v6 = vadd.f32 %v946_v4, %v654_v5 }
 0x25f   : > { %v657_v7 = vmax.f32 %v655_v6, 0.0 }
 0x261   : > { %874 = vmatmul.msk.f32.vlgmr.msrb.gmra.mxu0 %vm516_vm0, %v657_v7 }
 0x2de   : > { %v690_v11 = vpop.f32.mrf.mxu0 }
 0x2df   : > { %v691_v12 = vadd.f32 %v947_v10, %v690_v11 }
 0x2e1   : > { %694 = vst.msk [vmem:[#allocation2] sm:$0xff] %vm693_vm2, %v691_v12 }
 0x2e2 PF: > { %v702_v13 = vld [vmem:[%s1275_s10 + $0x18] sm:$0xff]  ;;  %v701_v14 = vld [vmem:[%s1275_s10 + $0x10] sm:$0xff]  ;;  %v700_v15 = vld [vmem:[%s1275_s10 + $0x8] sm:$0xff]  ;;  %vm703_vm3 = vcmask 261120   ;;  %v1091_v19 = vmov 0   ;;  %vm748_vm4 = vcmask 7168  }
 0x2e3   : > { %719 = vmatpush.msra.mxu0 %v702_v13  ;;  %v699_v16 = vld [vmem:[%s1275_s10] sm:$0xff]  ;;  %948 = vset.pattern.permute.xlu0 %v1091_v19  ;;  %v728_v20 = vld [vmem:[%s1522_s13] sm:$0xff]  ;;  %s877_s16 = sshll.u32 %s1188_s17, 3  ;;  %s1552_s21 = sld [smem:[#allocation20_spill]] }
 0x2e4   : > { %s764_s29 = sshll.u32 %s1282_s24, 4  ;;  %s752_s19 = scalar_lea.sflag [#allocation5], %s1271_s15  ;;  %s765_s29 = int_to_ptr.vmem [resolvable:$true] %s764_s29 }
 0x2e5   : > { %720 = vmatpush.msra.mxu0 %v701_v14 }
 0x2e7   : > { %721 = vmatpush.msra.mxu0 %v700_v15 }
 0x2e8   : > { %v698_v17 = vld [vmem:[#allocation2] sm:$0xff] }
 0x2e9   : > { %722 = vmatpush.msra.mxu0 %v699_v16  ;;  %s762_s12 = scalar_lea.hbm %s1552_s21, %s877_s16  ;;  %s1033_s27 = scalar_lea.hbm %s1552_s21, 32 }
 0x2ea   : > { %875 = vmatmul.msk.f32.vlgmr.msra.gmra.mxu0 %vm703_vm3, %v698_v17  ;;  %s766_s28 = sshll.u32 %s762_s12, 4  ;;  %s767_s28 = int_to_ptr.hbm [resolvable:$true] %s766_s28 }
 0x2eb   : > { %s1027_s23 = sshra.s32 %s767_s28, 4  ;;  %s1028_s23 = int_to_ptr.hbm [resolvable:$true] %s1027_s23 }
 0x2ec   : > { %s1029_s20 = scalar_lea.hbm %s1028_s23, 8  ;;  %p1034_p10 = scmp.lt.s32.totalorder %s1028_s23, %s1552_s21 }
 0x2ed   : > { %p1030_p4 = scmp.ne.s32.totalorder %s1028_s23, %s1029_s20  ;;  %p1035_p2 = scmp.lt.s32.totalorder %s1033_s27, %s1029_s20 }
 0x2ef   : > { %p1031_p8 = pnand %p1030_p4, %p1237_p7  ;;  %p1036_p11 = por %p1035_p2, %p1034_p10 }
 0x2f1   : > { %p1032_p9 = pneg %p1031_p8 }
 0x2f3   : > { %p1037_p12 = pnand %p1036_p11, %p1032_p9 }
 0x367   : > { %v724_v18 = vpop.f32.mrf.mxu0 }
 0x368   : > { %727 = vst [vmem:[%s1282_s24] sm:$0xff] %v724_v18  ;;  %729 = vmax.xlane.f32.xlu0 %v724_v18 }
 0x3db   : > { %v730_v21 = vpop.xlane.xlu0 %729 }
 0x3dc   : > { %v731_v22 = vmax.f32 %v728_v20, %v730_v21 }
 0x3de   : > { %v732_v23 = vsub.f32 %v728_v20, %v731_v22  ;;  %750 = vst.msk [vmem:[%s1522_s13] sm:$0xff] %vm748_vm4, %v731_v22  ;;  %739 = vperm.xlu0 %948, %v731_v22  }
 0x450   : > { %v740_v24 = vpop.permute.xlu0 %739 }
 0x451   : > { %v742_v25 = vsub.f32 %v724_v18, %v740_v24 }
 0x453   : > { %v743_v26 = vmul.f32 1.442695, %v742_v25 }
 0x454   : > { %1040 = shalt.err (!%p1037_p12)
}
 0x455   : > { %886 = dma.vmem_to_hbm [thread:$0]  (%p1237_p7), %s765_s29, 128, %s767_s28, %s752_s19   ;;  %949 = vpow2.f32 %v743_v26  ;;  %v733_v28 = vmul.f32 1.442695, %v732_v23  ;;  %v735_v30 = vld [vmem:[%s1523_s14] sm:$0xff] }
 0x457   : > { %951 = vpow2.f32 %v733_v28 }
 0x45b   : > { %v950_v27 = vpop.eup %949 }
 0x45c   : > { %745 = vadd.xlane.f32.xlu1 %v950_v27 }
 0x45d   : > { %v952_v29 = vpop.eup %951 }
 0x45e   : > { %v736_v31 = vmul.f32 %v952_v29, %v735_v30 }
 0x4cf   : > { %v746_v32 = vpop.xlane.xlu1 %745 }
 0x4d0   : > { %v747_v33 = vadd.f32 %v746_v32, %v736_v31 }
 0x4d2   : > { %749 = vst.msk [vmem:[%s1523_s14] sm:$0xff] %vm748_vm4, %v747_v33 }
 0x4d3 PF: > { %s1553_s7 = sld [smem:[#allocation14_spill]] }
 0x4d4   : > { %s1554_s25 = sld [smem:[#allocation12_spill]] }
 0x4d9   : > { %p903_p7 = scmp.ge.s32.totalorder %s1553_s7, 2 }
 0x4da   : > { %s790_s29 = sand.u32 1, %s1554_s25  }
 0x4db   : > { %p897_p13 = pnand %p903_p7, %p1202_p6  ;;  %s791_s28 = scalar_lea.sflag [#allocation5], %s790_s29 }
 0x4dd   : > { %p898_p0 = pneg %p897_p13 }
 0x4df   : > { %1066 = dma.done.wait (%p898_p0), %s791_s28, 128  }
 0x4e0   : > { %1068 = vsyncadd (%p898_p0), %s791_s28, 4294967168  ;;  %s1556_s16 = sld [smem:[#allocation16_spill]]  ;;  %s1559_s29 = smov %s1075_s30 }
 0x4e1   : > { %s1557_s19 = sld [smem:[#allocation13_spill]] }
 0x4e2   : > { %s1558_s15 = sld [smem:[#allocation17_spill]] }
 0x4e6   : > { %p29_p3 = scmp.ge.s32.totalorder %s1556_s16, 6  }
 0x4e7   : > { %s1560_s30 = smov %s1557_s19 }
 0x4e8   :  { %31 = sbr.rel (!%p29_p3) target bundleno = 10 (0xa), region = 138 }
 0x4ed   :  { %797 = vsyncpa [#allocation4], 1 }
 0x4ee   :  { %799 = vsyncpa [#allocation4 + $0x1], 1 }
 0x4ef   :  { %800 = vsyncpa [#allocation7], 1 }
 0x4f0   :  { %802 = vsyncpa [#allocation7 + $0x1], 1 }
 0x4f1   :  { %803 = vsyncpa [#allocation5], 1 }
 0x4f2   :  { %805 = vsyncpa [#allocation5 + $0x1], 1 }

</bundles_post_ra>
